<compile_context>
chip_gen: v6e
topology: v6e:2x2x1
jax: 0.10.0
libtpu: 0.0.40
codegen_flags: <defaults>
</compile_context>

<pallas_src>
import functools

import jax
import jax.numpy as jnp
from jax import lax
from jax.experimental import pallas as pl
from jax.experimental.pallas import tpu as pltpu


def _mha_kernel(x_ref, wqkv_ref, bqkv_ref, mask_ref, out_ref, *,
                n_head: int, embed_dim: int):
    n = x_ref.shape[0]
    he = n_head * embed_dim

    x = x_ref[...]                                            # (N, word_size)

    # Fused, lane-dense QKV projection for all heads in one MXU matmul.
    # (N, W) @ (W, 3*H*E) -> (N, 3*H*E); bias broadcasts over rows.
    # 1/sqrt(embed_dim) is folded into the Q columns, and the output
    # projection is folded into the V columns (both at param-prep time).
    qkv = jnp.dot(x, wqkv_ref[...],
                  preferred_element_type=jnp.float32) + bqkv_ref[...]

    # Pack heads along sublanes: (N, H*E) lanes -> (H*N, E) rows, head-major.
    def pack(base):
        return jnp.concatenate(
            [qkv[:, base + h * embed_dim: base + (h + 1) * embed_dim]
             for h in range(n_head)], axis=0)                 # (H*N, E)

    q_all = pack(0 * he)          # pre-scaled
    k_all = pack(1 * he)
    v_all = pack(2 * he)          # already carries the output projection

    # One score matmul for all heads: (H*N, E) . (H*N, E)^T -> (H*N, H*N),
    # contracting last dims (no explicit transpose / XLU transpose).
    s = lax.dot_general(q_all, k_all, (((1,), (1,)), ((), ())),
                        preferred_element_type=jnp.float32)
    # Block-diagonal additive mask (0 on per-head blocks, -1e30 elsewhere),
    # applied before the row max so cross-head entries exp() to exactly 0.
    s = s + mask_ref[...]

    # Single softmax pass over the whole packed (32,32) tile.
    s = s - jnp.max(s, axis=-1, keepdims=True)
    p = jnp.exp(s)
    p = p * pl.reciprocal(jnp.sum(p, axis=-1, keepdims=True), approx=True)

    # One PV' matmul for all heads; masked entries of p are exactly 0 so the
    # cross-head contributions vanish.
    z_all = jnp.dot(p, v_all, preferred_element_type=jnp.float32)   # (H*N, E)

    # Sum over the (sublane-aligned) per-head blocks == Z_s @ proj.
    out = z_all[0:n, :]
    for h in range(1, n_head):
        out = out + z_all[h * n:(h + 1) * n, :]
    out_ref[...] = out.astype(out_ref.dtype)


def prepare_params(wq, bq, wk, bk, wv, bv, proj, *, embed_dim):
    """One-time host-side parameter prep.

    wq/wk/wv: (n_head, word_size, embed_dim)  (already x @ W layout)
    bq/bk/bv: (n_head, 1, embed_dim)
    proj:     (n_head * embed_dim, embed_dim)

    Returns a fused (word_size, 3*n_head*embed_dim) weight and a
    (1, 3*n_head*embed_dim) bias, with:
      * the 1/sqrt(embed_dim) attention scale folded into the Q part,
      * the output projection (block-diagonal per head) folded into the V
        part: Wv'_h = Wv_h @ proj_h, bv'_h = bv_h @ proj_h.
    """
    n_head, word_size, e = wq.shape
    e_out = proj.shape[-1]
    assert e_out == embed_dim
    scale = 1.0 / jnp.sqrt(jnp.float32(embed_dim))

    proj_h = proj.reshape(n_head, e, e_out)                   # (H, E, E_out)
    wv_f = jnp.einsum('hwe,heo->hwo', wv, proj_h)             # (H, W, E_out)
    bv_f = jnp.einsum('hxe,heo->hxo', bv, proj_h)             # (H, 1, E_out)

    def flat_w(w):   # (H, W, E) -> (W, H*E), head-major along lanes
        return jnp.transpose(w, (1, 0, 2)).reshape(word_size, -1)

    def flat_b(b):   # (H, 1, E) -> (1, H*E)
        return b.reshape(1, -1)

    wqkv = jnp.concatenate(
        [flat_w(wq) * scale, flat_w(wk), flat_w(wv_f)], axis=1)
    bqkv = jnp.concatenate(
        [flat_b(bq) * scale, flat_b(bk), flat_b(bv_f)], axis=1)
    return wqkv, bqkv


def make_head_mask(n, n_head, neg=-1e30):
    """(H*N, H*N) additive mask: 0 on per-head diagonal blocks, `neg` off."""
    head = jnp.arange(n_head * n) // n
    same = head[:, None] == head[None, :]
    return jnp.where(same, 0.0, neg).astype(jnp.float32)


def multihead_attention(x, wqkv, bqkv, head_mask, *, n_head, embed_dim):
    """x: (N, word_size); wqkv: (word_size, 3*n_head*embed_dim);
    bqkv: (1, 3*n_head*embed_dim); head_mask: (n_head*N, n_head*N)."""
    n, _ = x.shape
    kernel = functools.partial(_mha_kernel, n_head=n_head, embed_dim=embed_dim)
    vmem = pltpu.MemorySpace.VMEM
    return pl.pallas_call(
        kernel,
        out_shape=jax.ShapeDtypeStruct((n, embed_dim), x.dtype),
        in_specs=[
            pl.BlockSpec(memory_space=vmem),    # x
            pl.BlockSpec(memory_space=vmem),    # fused Wqkv (proj folded in)
            pl.BlockSpec(memory_space=vmem),    # fused bqkv
            pl.BlockSpec(memory_space=vmem),    # block-diagonal head mask
        ],
        out_specs=pl.BlockSpec(memory_space=vmem),
    )(x, wqkv, bqkv, head_mask)


def _reference(x, wq, bq, wk, bk, wv, bv, proj, *, n_head, embed_dim):
    """Plain-JAX reference mirroring the PyTorch forward."""
    zs = []
    for h in range(n_head):
        q = x @ wq[h] + bq[h]
        k = x @ wk[h] + bk[h]
        v = x @ wv[h] + bv[h]
        score = (q @ k.T) / jnp.sqrt(jnp.float32(embed_dim))
        p = jax.nn.softmax(score, axis=-1)
        zs.append(p @ v)
    z_s = jnp.concatenate(zs, axis=1)
    return z_s @ proj


if __name__ == "__main__":
    # Small, module-consistent shapes.
    N = 8            # sequence length (rows of x)
    WORD_SIZE = 64   # input feature size
    EMBED_DIM = 32   # per-head embedding dim (== output dim of proj)
    N_HEAD = 4

    key = jax.random.PRNGKey(0)
    ks = jax.random.split(key, 9)

    x = jax.random.normal(ks[0], (N, WORD_SIZE), dtype=jnp.float32)

    # nn.Linear-style init (uniform in [-1/sqrt(fan_in), 1/sqrt(fan_in)]),
    # stored pre-transposed as (n_head, word_size, embed_dim).
    bound = 1.0 / jnp.sqrt(jnp.float32(WORD_SIZE))

    def lin_w(k):
        return jax.random.uniform(k, (N_HEAD, WORD_SIZE, EMBED_DIM),
                                  minval=-bound, maxval=bound, dtype=jnp.float32)

    def lin_b(k):
        return jax.random.uniform(k, (N_HEAD, 1, EMBED_DIM),
                                  minval=-bound, maxval=bound, dtype=jnp.float32)

    wq, bq = lin_w(ks[1]), lin_b(ks[2])
    wk, bk = lin_w(ks[3]), lin_b(ks[4])
    wv, bv = lin_w(ks[5]), lin_b(ks[6])

    # xavier_uniform_ for proj: (embed_dim*n_head, embed_dim)
    fan_in, fan_out = EMBED_DIM * N_HEAD, EMBED_DIM
    xav = jnp.sqrt(6.0 / (fan_in + fan_out))
    proj = jax.random.uniform(ks[7], (EMBED_DIM * N_HEAD, EMBED_DIM),
                              minval=-xav, maxval=xav, dtype=jnp.float32)

    # One-time host-side fusion: Q scale + output projection folded in.
    wqkv, bqkv = prepare_params(wq, bq, wk, bk, wv, bv, proj,
                                embed_dim=EMBED_DIM)
    head_mask = make_head_mask(N, N_HEAD)
    wqkv = jax.block_until_ready(wqkv)
    bqkv = jax.block_until_ready(bqkv)
    head_mask = jax.block_until_ready(head_mask)

    out = multihead_attention(x, wqkv, bqkv, head_mask,
                              n_head=N_HEAD, embed_dim=EMBED_DIM)
    out = jax.block_until_ready(out)

    ref = _reference(x, wq, bq, wk, bk, wv, bv, proj,
                     n_head=N_HEAD, embed_dim=EMBED_DIM)
    assert out.shape == (N, EMBED_DIM)
    # Slightly relaxed tolerance: pl.reciprocal(approx=True) in the softmax
    # normalizer carries ~1e-4 relative error vs. the exact f32 reference.
    assert jnp.allclose(out, ref, atol=5e-3, rtol=5e-3), "mismatch vs reference"

    print("KERNEL_OK")
</pallas_src>

<mosaic_0001>
module attributes {stable_mosaic.version = 11 : i64} {
  func.func @_mha_kernel(%arg0: memref<8x64xf32, #tpu.memory_space<vmem>>, %arg1: memref<64x384xf32, #tpu.memory_space<vmem>>, %arg2: memref<1x384xf32, #tpu.memory_space<vmem>>, %arg3: memref<32x32xf32, #tpu.memory_space<vmem>>, %arg4: memref<8x32xf32, #tpu.memory_space<vmem>>) attributes {dimension_semantics = [], scalar_prefetch = 0 : i64, scratch_operands = 0 : i64, tpu.core_type = #tpu.core_type<tc>} {
    %c0 = arith.constant 0 : index
    %c0_0 = arith.constant 0 : index
    %0 = vector.load %arg0[%c0, %c0_0] : memref<8x64xf32, #tpu.memory_space<vmem>>, vector<8x64xf32>
    %c0_1 = arith.constant 0 : index
    %c0_2 = arith.constant 0 : index
    %1 = vector.load %arg1[%c0_1, %c0_2] : memref<64x384xf32, #tpu.memory_space<vmem>>, vector<64x384xf32>
    %cst = arith.constant dense<0.000000e+00> : vector<8x384xf32>
    %2 = tpu.matmul %0, %1, %cst {dimension_numbers = #tpu.dot_dimension_numbers<[1], [0], [0], [1], [0, 0, 1, 1], [], []>} : vector<8x64xf32>, vector<64x384xf32>, vector<8x384xf32> -> vector<8x384xf32>
    %c0_3 = arith.constant 0 : index
    %c0_4 = arith.constant 0 : index
    %3 = vector.load %arg2[%c0_3, %c0_4] : memref<1x384xf32, #tpu.memory_space<vmem>>, vector<1x384xf32>
    %4 = vector.broadcast %3 : vector<1x384xf32> to vector<8x384xf32>
    %5 = arith.addf %2, %4 : vector<8x384xf32>
    %6 = vector.extract_strided_slice %5 {offsets = [0, 0], sizes = [8, 32], strides = [1, 1]} : vector<8x384xf32> to vector<8x32xf32>
    %7 = vector.extract_strided_slice %5 {offsets = [0, 32], sizes = [8, 32], strides = [1, 1]} : vector<8x384xf32> to vector<8x32xf32>
    %8 = vector.extract_strided_slice %5 {offsets = [0, 64], sizes = [8, 32], strides = [1, 1]} : vector<8x384xf32> to vector<8x32xf32>
    %9 = vector.extract_strided_slice %5 {offsets = [0, 96], sizes = [8, 32], strides = [1, 1]} : vector<8x384xf32> to vector<8x32xf32>
    %10 = tpu.concatenate %6, %7, %8, %9 in 0 : vector<8x32xf32>, vector<8x32xf32>, vector<8x32xf32>, vector<8x32xf32> -> vector<32x32xf32>
    %11 = vector.extract_strided_slice %5 {offsets = [0, 128], sizes = [8, 32], strides = [1, 1]} : vector<8x384xf32> to vector<8x32xf32>
    %12 = vector.extract_strided_slice %5 {offsets = [0, 160], sizes = [8, 32], strides = [1, 1]} : vector<8x384xf32> to vector<8x32xf32>
    %13 = vector.extract_strided_slice %5 {offsets = [0, 192], sizes = [8, 32], strides = [1, 1]} : vector<8x384xf32> to vector<8x32xf32>
    %14 = vector.extract_strided_slice %5 {offsets = [0, 224], sizes = [8, 32], strides = [1, 1]} : vector<8x384xf32> to vector<8x32xf32>
    %15 = tpu.concatenate %11, %12, %13, %14 in 0 : vector<8x32xf32>, vector<8x32xf32>, vector<8x32xf32>, vector<8x32xf32> -> vector<32x32xf32>
    %16 = vector.extract_strided_slice %5 {offsets = [0, 256], sizes = [8, 32], strides = [1, 1]} : vector<8x384xf32> to vector<8x32xf32>
    %17 = vector.extract_strided_slice %5 {offsets = [0, 288], sizes = [8, 32], strides = [1, 1]} : vector<8x384xf32> to vector<8x32xf32>
    %18 = vector.extract_strided_slice %5 {offsets = [0, 320], sizes = [8, 32], strides = [1, 1]} : vector<8x384xf32> to vector<8x32xf32>
    %19 = vector.extract_strided_slice %5 {offsets = [0, 352], sizes = [8, 32], strides = [1, 1]} : vector<8x384xf32> to vector<8x32xf32>
    %20 = tpu.concatenate %16, %17, %18, %19 in 0 : vector<8x32xf32>, vector<8x32xf32>, vector<8x32xf32>, vector<8x32xf32> -> vector<32x32xf32>
    %cst_5 = arith.constant dense<0.000000e+00> : vector<32x32xf32>
    %21 = tpu.matmul %10, %15, %cst_5 {dimension_numbers = #tpu.dot_dimension_numbers<[1], [1], [0], [0], [0, 0, 1, 0], [], []>} : vector<32x32xf32>, vector<32x32xf32>, vector<32x32xf32> -> vector<32x32xf32>
    %c0_6 = arith.constant 0 : index
    %c0_7 = arith.constant 0 : index
    %22 = vector.load %arg3[%c0_6, %c0_7] : memref<32x32xf32, #tpu.memory_space<vmem>>, vector<32x32xf32>
    %23 = arith.addf %21, %22 : vector<32x32xf32>
    %cst_8 = arith.constant dense<0xFF800000> : vector<32xf32>
    %24 = vector.multi_reduction <maximumf>, %23, %cst_8 [1] : vector<32x32xf32> to vector<32xf32>
    %25 = vector.shape_cast %24 : vector<32xf32> to vector<32x1xf32>
    %26 = vector.broadcast %25 : vector<32x1xf32> to vector<32x32xf32>
    %27 = arith.subf %23, %26 : vector<32x32xf32>
    %28 = math.exp %27 : vector<32x32xf32>
    %cst_9 = arith.constant dense<0.000000e+00> : vector<32xf32>
    %29 = vector.multi_reduction <add>, %28, %cst_9 [1] : vector<32x32xf32> to vector<32xf32>
    %30 = vector.shape_cast %29 : vector<32xf32> to vector<32x1xf32>
    %31 = tpu.reciprocal %30 {approx = true} : vector<32x1xf32> -> vector<32x1xf32>
    %32 = vector.broadcast %31 : vector<32x1xf32> to vector<32x32xf32>
    %33 = arith.mulf %28, %32 : vector<32x32xf32>
    %cst_10 = arith.constant dense<0.000000e+00> : vector<32x32xf32>
    %34 = tpu.matmul %33, %20, %cst_10 {dimension_numbers = #tpu.dot_dimension_numbers<[1], [0], [0], [1], [0, 0, 1, 1], [], []>} : vector<32x32xf32>, vector<32x32xf32>, vector<32x32xf32> -> vector<32x32xf32>
    %35 = vector.extract_strided_slice %34 {offsets = [0, 0], sizes = [8, 32], strides = [1, 1]} : vector<32x32xf32> to vector<8x32xf32>
    %36 = vector.extract_strided_slice %34 {offsets = [8, 0], sizes = [8, 32], strides = [1, 1]} : vector<32x32xf32> to vector<8x32xf32>
    %37 = arith.addf %35, %36 : vector<8x32xf32>
    %38 = vector.extract_strided_slice %34 {offsets = [16, 0], sizes = [8, 32], strides = [1, 1]} : vector<32x32xf32> to vector<8x32xf32>
    %39 = arith.addf %37, %38 : vector<8x32xf32>
    %40 = vector.extract_strided_slice %34 {offsets = [24, 0], sizes = [8, 32], strides = [1, 1]} : vector<32x32xf32> to vector<8x32xf32>
    %41 = arith.addf %39, %40 : vector<8x32xf32>
    %c0_11 = arith.constant 0 : index
    %c0_12 = arith.constant 0 : index
    %42 = vector.load %arg4[%c0_11, %c0_12] : memref<8x32xf32, #tpu.memory_space<vmem>>, vector<8x32xf32>
    tpu.vector_store %arg4[%c0_11, %c0_12], %41 {strides = array<i32>} : memref<8x32xf32, #tpu.memory_space<vmem>>, vector<8x32xf32>,
    return
  }
}

</mosaic_0001>

<bundles_post_ra>
// kernel: tpu_custom_call.1
= control target key start
LH: loop header
LB: loop body
LE: loop exit
PB: predicated region body
PF: predicated region fallthrough
CT: control target
= control target key end

     0   :  { %9 = vsyncpa [#allocation3], 0  ;;  %s845_s0 = inlined_call_operand.hbm [shape: f32[8,64], index: 0, kind: input, shape index: {}]   ;;  %s846_s1 = inlined_call_operand.hbm [shape: f32[64,384], index: 1, kind: input, shape index: {}]   ;;  %s847_s2 = inlined_call_operand.vmem [shape: f32[1,384], index: 2, kind: input, shape index: {}]   ;;  %s848_s3 = inlined_call_operand.hbm [shape: f32[32,32], index: 3, kind: input, shape index: {}]   ;;  %s849_s4 = inlined_call_operand.hbm [shape: f32[8,32], index: 4, kind: output, shape index: {}]  }
   0x1   :  { %10 = vsyncpa [#allocation6], 0 }
   0x2   :  { %11 = vsyncpa [#allocation4], 0  ;;  %s736_s15 = smov [#allocation5]  }
   0x3   :  { %s27_s16 = sshll.u32 %s736_s15, 4  ;;  %s28_s16 = int_to_ptr.vmem [resolvable:$true] %s27_s16 }
   0x4   :  { %s658_s17 = scalar_lea.vmem %s28_s16, 3072  ;;  %p663_p1 = scmp.lt.s32.totalorder %s28_s16, %s28_s16 }
   0x5   :  { %p659_p0 = scmp.ne.s32.totalorder %s28_s16, %s658_s17  ;;  %p664_p2 = scmp.lt.s32.totalorder %s658_s17, %s658_s17 }
   0x7   :  { %p665_p3 = por %p664_p2, %p663_p1 }
   0x9   :  { %p666_p4 = pnand %p665_p3, %p659_p0 }
   0xb   :  { %669 = shalt.err (!%p666_p4)
}
   0xc   :  { %s737_s18 = smov 384   ;;  %s738_s19 = smov 24  }
   0xd   :  { %33 = dma.hbm_to_vmem [thread:$0]  %s846_s1, 3072, %s28_s16, [#allocation6], %s737_s18, %s737_s18, %s738_s19  }
   0xe   :  { %s739_s22 = smov [#allocation2]   ;;  %s740_s24 = smov [#allocation7]  }
   0xf   :  { %s18_s23 = sshll.u32 %s739_s22, 4  ;;  %s41_s25 = sshll.u32 %s740_s24, 4  ;;  %s19_s23 = int_to_ptr.vmem [resolvable:$true] %s18_s23  ;;  %s42_s25 = int_to_ptr.vmem [resolvable:$true] %s41_s25 }
  0x10   :  { %s678_s26 = scalar_lea.vmem %s19_s23, 128  ;;  %p683_p6 = scmp.lt.s32.totalorder %s19_s23, %s19_s23 }
  0x11   :  { %p679_p5 = scmp.ne.s32.totalorder %s19_s23, %s678_s26  ;;  %p684_p7 = scmp.lt.s32.totalorder %s678_s26, %s678_s26 }
  0x13   :  { %p685_p8 = por %p684_p7, %p683_p6 }
  0x15   :  { %p686_p9 = pnand %p685_p8, %p679_p5 }
  0x17   :  { %689 = shalt.err (!%p686_p9)
}
  0x18   :  { %21 = dma.hbm_to_vmem [thread:$0]  %s845_s0, 128, %s19_s23, [#allocation3]  }
  0x19   :  { %s698_s29 = scalar_lea.vmem %s42_s25, 512  ;;  %p703_p11 = scmp.lt.s32.totalorder %s42_s25, %s42_s25 }
  0x1a   :  { %p699_p10 = scmp.ne.s32.totalorder %s42_s25, %s698_s29  ;;  %p704_p12 = scmp.lt.s32.totalorder %s698_s29, %s698_s29 }
  0x1c   :  { %p705_p13 = por %p704_p12, %p703_p11 }
  0x1e   :  { %p706_p0 = pnand %p705_p13, %p699_p10 }
  0x20   :  { %709 = shalt.err (!%p706_p0)
}
  0x21   :  { %s741_s1 = smov 128   ;;  %s742_s30 = smov 8  }
  0x22   :  { %47 = dma.hbm_to_vmem [thread:$0]  %s848_s3, 512, %s42_s25, [#allocation6], %s741_s1, %s741_s1, %s742_s30  }
  0x23   :  { %730 = dma.done.wait [#allocation3], 128  }
  0x24   :  { %731 = vsyncadd [#allocation3], 4294967168 }
  0x25   :  { %732 = dma.done.wait [#allocation6], 3584  }
  0x26   :  { %733 = vsyncadd [#allocation6], 4294963712  ;;  %v743_v0 = vmov 0.0   ;;  %v80_v1 = vld [vmem:[#allocation5 + $0xb0] sm:$0xff]  ;;  %v79_v2 = vld [vmem:[#allocation5 + $0xa8] sm:$0xff]  ;;  %vm99_vm0 = vcmask 523264   ;;  %v84_v18 = vlaneseq }
  0x27   :  { %167 = vmatprep.mubr.f32.mxu0 %v743_v0  ;;  %574 = vmatprep.subr.mxu1 %v743_v0  ;;  %v77_v3 = vld [vmem:[#allocation5 + $0x98] sm:$0xff]  ;;  %v76_v4 = vld [vmem:[#allocation5 + $0x90] sm:$0xff]  ;;  %v74_v5 = vld [vmem:[#allocation5 + $0x80] sm:$0xff]  ;;  %vm272_vm1 = vcmask 261120   ;;  %s744_s7 = smov 96   ;;  %s745_s8 = smov 32  }
  0x28   :  { %119 = vmatprep.subr.mxu0 %v80_v1  ;;  %v73_v6 = vld [vmem:[#allocation5 + $0x78] sm:$0xff]  ;;  %v71_v7 = vld [vmem:[#allocation5 + $0x68] sm:$0xff]  ;;  %v70_v8 = vld [vmem:[#allocation5 + $0x60] sm:$0xff]  ;;  %v786_v19 = vshrl.u32 %v84_v18, 7  ;;  %vm747_vm2 = vmmov 0   ;;  %s748_s9 = smov [#allocation8]  }
  0x29   :  { %120 = vmatpush1.msra.mxu0 %v79_v2  ;;  %v68_v9 = vld [vmem:[#allocation5 + $0x50] sm:$0xff]  ;;  %v67_v10 = vld [vmem:[#allocation5 + $0x48] sm:$0xff]  ;;  %v65_v11 = vld [vmem:[#allocation5 + $0x38] sm:$0xff]  ;;  %590 = vmatprep.mubr.msk.f32.mxu1 %vm747_vm2, %v743_v0  ;;  %s525_s10 = sshll.u32 %s748_s9, 4  ;;  %s526_s10 = int_to_ptr.vmem [resolvable:$true] %s525_s10 }
  0x2a   :  { %121 = vmatprep.subr.mxu0 %v77_v3  ;;  %v64_v12 = vld [vmem:[#allocation5 + $0x30] sm:$0xff]  ;;  %v62_v13 = vld [vmem:[#allocation5 + $0x20] sm:$0xff]  ;;  %v61_v14 = vld [vmem:[#allocation5 + $0x18] sm:$0xff]  ;;  %v86_v20 = vsub.s32 0, %v786_v19  ;;  %v90_v22 = vsub.s32 1, %v786_v19  ;;  %v94_v60 = vsub.s32 2, %v786_v19  ;;  %p715_p2 = scmp.lt.s32.totalorder %s526_s10, %s526_s10 }
  0x2b   :  { %122 = vmatpush1.msra.mxu0 %v76_v4  ;;  %v59_v15 = vld [vmem:[#allocation5 + $0x8] sm:$0xff]  ;;  %v58_v16 = vld [vmem:[#allocation5] sm:$0xff]  ;;  %v57_v17 = vld [vmem:[#allocation2] sm:$0xff]  ;;  %s710_s11 = scalar_lea.vmem %s526_s10, 128 }
  0x2c   :  { %123 = vmatprep.subr.mxu0 %v74_v5  ;;  %v792_v21 = vld [vmem:[%s847_s2] sm:$0x7]  ;;  %s746_s2 = smov 64   ;;  %v78_v30 = vld [vmem:[#allocation5 + $0xa0] sm:$0xff]  ;;  %v75_v31 = vld [vmem:[#allocation5 + $0x88] sm:$0xff]  ;;  %p711_p1 = scmp.ne.s32.totalorder %s526_s10, %s710_s11 }
  0x2d   :  { %124 = vmatpush1.msra.mxu0 %v73_v6  ;;  %v87_v23 = vrot.slane %v792_v21, %v86_v20  ;;  %v91_v24 = vrot.slane %v792_v21, %v90_v22  ;;  %v81_v29 = vld [vmem:[#allocation5 + $0xb8] sm:$0xff]  ;;  %v72_v32 = vld [vmem:[#allocation5 + $0x70] sm:$0xff]  ;;  %v66_v34 = vld [vmem:[#allocation5 + $0x40] sm:$0xff]  ;;  %v95_v62 = vrot.slane %v792_v21, %v94_v60  ;;  %p716_p3 = scmp.lt.s32.totalorder %s710_s11, %s710_s11 }
  0x2e   :  { %125 = vmatprep.subr.mxu0 %v71_v7  ;;  %575 = vmatpush3.msra.mxu1 %v81_v29  ;;  %v69_v33 = vld [vmem:[#allocation5 + $0x58] sm:$0xff]  ;;  %v63_v35 = vld [vmem:[#allocation5 + $0x28] sm:$0xff]  ;;  %v60_v36 = vld [vmem:[#allocation5 + $0x10] sm:$0xff] }
  0x2f   :  { %126 = vmatpush1.msra.mxu0 %v70_v8  ;;  %576 = vmatprep.subr.mxu1 %v743_v0  ;;  %v269_v45 = vld [vmem:[#allocation7 + $0x8] sm:$0xff]  ;;  %v268_v47 = vld [vmem:[#allocation7] sm:$0xff]  ;;  %v270_v53 = vld [vmem:[#allocation7 + $0x10] sm:$0xff]  ;;  %p717_p4 = por %p716_p3, %p715_p2 }
  0x30   :  { %127 = vmatprep.subr.mxu0 %v68_v9  ;;  %577 = vmatpush3.msra.mxu1 %v78_v30  ;;  %v271_v55 = vld [vmem:[#allocation7 + $0x18] sm:$0xff] }
  0x31   :  { %128 = vmatpush1.msra.mxu0 %v67_v10  ;;  %578 = vmatprep.subr.mxu1 %v743_v0  ;;  %p718_p5 = pnand %p717_p4, %p711_p1 }
  0x32   :  { %129 = vmatprep.subr.mxu0 %v65_v11  ;;  %579 = vmatpush3.msra.mxu1 %v75_v31 }
  0x33   :  { %130 = vmatpush1.msra.mxu0 %v64_v12  ;;  %580 = vmatprep.subr.mxu1 %v743_v0 }
  0x34   :  { %131 = vmatprep.subr.mxu0 %v62_v13  ;;  %581 = vmatpush3.msra.mxu1 %v72_v32 }
  0x35   :  { %132 = vmatpush1.msra.mxu0 %v61_v14  ;;  %582 = vmatprep.subr.mxu1 %v743_v0 }
  0x36   :  { %133 = vmatprep.subr.mxu0 %v59_v15  ;;  %583 = vmatpush3.msra.mxu1 %v69_v33 }
  0x37   :  { %134 = vmatpush1.msra.mxu0 %v58_v16  ;;  %584 = vmatprep.subr.mxu1 %v743_v0 }
  0x38   :  { %535 = vmatmul.mubr.msk.f32.vlgmr.msra.gmra.mxu0 %vm99_vm0, %v57_v17  ;;  %585 = vmatpush3.msra.mxu1 %v66_v34 }
  0x39   :  { %586 = vmatprep.subr.mxu1 %v743_v0 }
  0x3a   :  { %587 = vmatpush3.msra.mxu1 %v63_v35 }
  0x3b   :  { %588 = vmatprep.subr.mxu1 %v743_v0 }
  0x3c   :  { %589 = vmatpush3.msra.mxu1 %v60_v36 }
  0x3d   :  { %591 = vmatmul.mubr.msk.f32.vlgmr.msra.gmra.mxu1 %vm99_vm0, %v57_v17 }
  0xf8   :  { %v169_v25 = vpop.f32.mrf.mxu0 }
  0xf9   :  { %v170_v26 = vadd.f32 %v169_v25, %v87_v23 }
  0xfa   :  { %v171_v27 = vpop.f32.mrf.mxu0 }
  0xfb   :  { %v172_v28 = vadd.f32 %v171_v27, %v91_v24  ;;  %601 = vmatprep.mubr.msk.f32.mxu0 %vm272_vm1, %v170_v26 }
  0xfd   :  { %252 = vrot.lane.b32.xlu1 %v172_v28, %s744_s7  ;;  %256 = vrot.lane.b32.xlu0 %v172_v28, %s745_s8  ;;  %v240_v43 = vpop.f32.mrf.mxu1 }
  0xfe   :  { %v241_v63 = vadd.f32 %v240_v43, %v95_v62 }
  0xff   :  { %v592_v44 = vpop.f32.mrf.mxu1 }
 0x101   :  { %254 = vrot.lane.b32.xlu0 %v172_v28, %s746_s2  ;;  %245 = vrot.lane.b32.xlu1 %v170_v26, %s744_s7 }
 0x105   :  { %247 = vrot.lane.b32.xlu0 %v170_v26, %s746_s2  ;;  %249 = vrot.lane.b32.xlu1 %v170_v26, %s745_s8 }
 0x16f   :  { %v257_v37 = vpop.permute.xlu0 %256  ;;  %v253_v39 = vpop.permute.xlu1 %252 }
 0x170   :  { %593 = vmatprep.subr.msk.mxu0 %vm272_vm1, %v257_v37 }
 0x171   :  { %594 = vmatpush3.xpose.msk.msra.mxu0 %vm272_vm1, %v257_v37 }
 0x173   :  { %v255_v38 = vpop.permute.xlu0 %254  ;;  %v246_v40 = vpop.permute.xlu1 %245 }
 0x174   :  { %595 = vmatprep.subr.msk.mxu0 %vm272_vm1, %v255_v38 }
 0x175   :  { %596 = vmatpush3.xpose.msk.msra.mxu0 %vm272_vm1, %v255_v38 }
 0x176   :  { %597 = vmatprep.subr.msk.mxu0 %vm272_vm1, %v253_v39 }
 0x177   :  { %v248_v41 = vpop.permute.xlu0 %247  ;;  %v250_v42 = vpop.permute.xlu1 %249 }
 0x179   :  { %598 = vmatpush3.xpose.msk.msra.mxu0 %vm272_vm1, %v253_v39 }
 0x17a   :  { %599 = vmatprep.subr.msk.mxu0 %vm272_vm1, %v172_v28 }
 0x17d   :  { %600 = vmatpush3.xpose.msk.msra.mxu0 %vm272_vm1, %v172_v28 }
 0x180   :  { %602 = vmatmul.mubr.msk.f32.vlgmr.msra.gmra.mxu0 %vm272_vm1, %v246_v40 }
 0x181   :  { %604 = vmatprep.mubr.msk.f32.mxu0 %vm272_vm1, %v248_v41 }
 0x184   :  { %605 = vmatmul.mubr.msk.f32.gmra.mxu0 %vm272_vm1, %v250_v42 }
 0x240   :  { %v603_v46 = vpop.f32.mrf.mxu0 }
 0x241   :  { %v361_v48 = vadd.f32 %v603_v46, %v269_v45 }
 0x242   :  { %v355_v49 = vpop.f32.mrf.mxu0 }
 0x243   :  { %v356_v50 = vadd.f32 %v355_v49, %v268_v47  ;;  %v377_v51 = vsel %vm272_vm1, %v361_v48, -inf }
 0x244   :  { %378 = vmax.xlane.f32.xlu1 %v377_v51  ;;  %v606_v52 = vpop.f32.mrf.mxu0 }
 0x245   :  { %v374_v54 = vsel %vm272_vm1, %v356_v50, -inf  ;;  %v371_v58 = vadd.f32 %v606_v52, %v271_v55 }
 0x246   :  { %v365_v56 = vpop.f32.mrf.mxu0  ;;  %375 = vmax.xlane.f32.xlu0 %v374_v54 }
 0x247   :  { %v366_v57 = vadd.f32 %v365_v56, %v270_v53  ;;  %v383_v61 = vsel %vm272_vm1, %v371_v58, -inf }
 0x249   :  { %v380_v59 = vsel %vm272_vm1, %v366_v57, -inf }
 0x24a   :  { %381 = vmax.xlane.f32.xlu0 %v380_v59 }
 0x24e   :  { %384 = vmax.xlane.f32.xlu0 %v383_v61 }
 0x255   :  { %265 = vrot.lane.b32.xlu1 %v241_v63, %s745_s8 }
 0x2cd   :  { %v379_v0 = vpop.xlane.xlu1 %378 }
 0x2ce   :  { %v387_v1 = vsub.f32 %v361_v48, %v379_v0 }
 0x2cf   :  { %v376_v2 = vpop.xlane.xlu0 %375 }
 0x2d0   :  { %v392_v3 = vmul.f32 1.442695, %v387_v1  ;;  %v386_v4 = vsub.f32 %v356_v50, %v376_v2 }
 0x2d1   :  { %v266_v5 = vpop.permute.xlu1 %265 }
 0x2d2   :  { %634 = vpow2.f32 %v392_v3  ;;  %v390_v6 = vmul.f32 1.442695, %v386_v4  ;;  %607 = vmatprep.subr.mxu1 %v266_v5 }
 0x2d3   :  { %v382_v7 = vpop.xlane.xlu0 %381  ;;  %608 = vmatpush3.msra.mxu1 %v266_v5 }
 0x2d4   :  { %636 = vpow2.f32 %v390_v6  ;;  %v388_v8 = vsub.f32 %v366_v57, %v382_v7 }
 0x2d6   :  { %v394_v9 = vmul.f32 1.442695, %v388_v8 }
 0x2d7   :  { %v385_v10 = vpop.xlane.xlu0 %384 }
 0x2d8   :  { %638 = vpow2.f32 %v394_v9  ;;  %v389_v11 = vsub.f32 %v371_v58, %v385_v10 }
 0x2da   :  { %v396_v12 = vmul.f32 1.442695, %v389_v11 }
 0x2dc   :  { %640 = vpow2.f32 %v396_v12 }
 0x2df   :  { %v635_v13 = vpop.eup %634 }
 0x2e0   :  { %v401_v14 = vsel %vm272_vm1, %v635_v13, 0.0 }
 0x2e1   :  { %v637_v15 = vpop.eup %636  ;;  %402 = vadd.xlane.f32.xlu0 %v401_v14 }
 0x2e2   :  { %v398_v16 = vsel %vm272_vm1, %v637_v15, 0.0 }
 0x2e3   :  { %399 = vadd.xlane.f32.xlu1 %v398_v16 }
 0x2e5   :  { %v639_v17 = vpop.eup %638 }
 0x2e6   :  { %v404_v18 = vsel %vm272_vm1, %v639_v17, 0.0 }
 0x2e7   :  { %405 = vadd.xlane.f32.xlu1 %v404_v18 }
 0x2e9   :  { %v641_v19 = vpop.eup %640 }
 0x2ea   :  { %v407_v20 = vsel %vm272_vm1, %v641_v19, 0.0 }
 0x2eb   :  { %408 = vadd.xlane.f32.xlu0 %v407_v20 }
 0x2f8   :  { %259 = vrot.lane.b32.xlu1 %v241_v63, %s744_s7 }
 0x301   :  { %262 = vrot.lane.b32.xlu0 %v241_v63, %s746_s2 }
 0x36a   :  { %v403_v21 = vpop.xlane.xlu0 %402 }
 0x36b   :  { %642 = vrcp.f32 %v403_v21 }
 0x36c   :  { %v400_v22 = vpop.xlane.xlu1 %399 }
 0x36d   :  { %644 = vrcp.f32 %v400_v22 }
 0x370   :  { %v406_v23 = vpop.xlane.xlu1 %405 }
 0x371   :  { %646 = vrcp.f32 %v406_v23 }
 0x374   :  { %v409_v24 = vpop.xlane.xlu0 %408  ;;  %v260_v28 = vpop.permute.xlu1 %259 }
 0x375   :  { %648 = vrcp.f32 %v409_v24 }
 0x378   :  { %v263_v25 = vpop.permute.xlu0 %262  ;;  %v643_v26 = vpop.eup %642 }
 0x379   :  { %609 = vmatprep.subr.mxu1 %v263_v25  ;;  %v415_v30 = vmul.f32 %v643_v26, %v635_v13 }
 0x37a   :  { %v645_v27 = vpop.eup %644  ;;  %610 = vmatpush3.msra.mxu1 %v263_v25 }
 0x37b   :  { %611 = vmatprep.subr.mxu1 %v260_v28  ;;  %v414_v29 = vmul.f32 %v645_v27, %v637_v15 }
 0x37c   :  { %612 = vmatpush3.msra.mxu1 %v260_v28 }
 0x37d   :  { %613 = vmatprep.subr.mxu1 %v241_v63  ;;  %615 = vmatprep.mubr.msk.f32.mxu1 %vm272_vm1, %v414_v29 }
 0x37e   :  { %v647_v31 = vpop.eup %646  ;;  %614 = vmatpush3.msra.mxu1 %v241_v63 }
 0x37f   :  { %616 = vmatmul.mubr.msk.f32.vlgmr.msra.gmra.mxu1 %vm272_vm1, %v415_v30  ;;  %v416_v32 = vmul.f32 %v647_v31, %v639_v17 }
 0x381   :  { %618 = vmatprep.mubr.msk.f32.mxu1 %vm272_vm1, %v416_v32 }
 0x382   :  { %v649_v33 = vpop.eup %648 }
 0x383   :  { %v417_v34 = vmul.f32 %v649_v33, %v641_v19 }
 0x385   :  { %619 = vmatmul.mubr.msk.f32.gmra.mxu1 %vm272_vm1, %v417_v34 }
 0x43f   :  { %v617_v35 = vpop.f32.mrf.mxu1 }
 0x441   :  { %v496_v36 = vpop.f32.mrf.mxu1 }
 0x442   :  { %v515_v38 = vadd.f32 %v617_v35, %v496_v36 }
 0x445   :  { %v620_v37 = vpop.f32.mrf.mxu1 }
 0x447   :  { %v506_v39 = vpop.f32.mrf.mxu1 }
 0x448   :  { %v516_v40 = vadd.f32 %v515_v38, %v506_v39 }
 0x44a   :  { %v517_v41 = vadd.f32 %v620_v37, %v516_v40 }
 0x44c   :  { %518 = vst.msk [vmem:[#allocation8] sm:$0xff] %vm272_vm1, %v517_v41 }
 0x44d   :  { %721 = shalt.err (!%p718_p5)
}
 0x44e   :  { %528 = dma.vmem_to_hbm [thread:$0]  %s526_s10, 128, %s849_s4, [#allocation4]  }
 0x44f   :  { %734 = dma.done.wait [#allocation4], 128  }
 0x450   :  { %735 = vsyncadd [#allocation4], 4294967168 }
 0x451   :  { %532 = vsyncpa [#allocation3], 1 }
 0x452   :  { %533 = vsyncpa [#allocation6], 1 }
 0x453   :  { %534 = vsyncpa [#allocation4], 1 }

</bundles_post_ra>
